<compile_context>
chip_gen: v7x
topology: tpu7x:2x2x1
jax: 0.10.0
libtpu: 0.0.40
codegen_flags: <defaults>
</compile_context>

<pallas_src>
import jax
import jax.numpy as jnp
from jax import lax
from jax.experimental import pallas as pl
from jax.experimental.pallas import tpu as pltpu


def _round_up(x, m):
    return (x + m - 1) // m * m


# ---------------------------------------------------------------------------
# Pass 1: fused q/k/v projections  (x @ W^T; scale folded into Wq by wrapper)
# ---------------------------------------------------------------------------
def _proj_kernel(q_ref, k_ref, v_ref, wq_ref, wk_ref, wv_ref,
                 qp_ref, kp_ref, vp_ref):
    qp_ref[...] = jnp.dot(q_ref[...], wq_ref[...],
                          preferred_element_type=jnp.float32).astype(qp_ref.dtype)
    kp_ref[...] = jnp.dot(k_ref[...], wk_ref[...],
                          preferred_element_type=jnp.float32).astype(kp_ref.dtype)
    vp_ref[...] = jnp.dot(v_ref[...], wv_ref[...],
                          preferred_element_type=jnp.float32).astype(vp_ref.dtype)


# ---------------------------------------------------------------------------
# Pass 2: causal flash attention with online softmax
# ---------------------------------------------------------------------------
def _flash_attn_kernel(qp_ref, kp_ref, vp_ref, o_ref, m_sc, l_sc, acc_sc):
    i = pl.program_id(1)            # q-tile index   ("parallel")
    j = pl.program_id(2)            # kv-tile index  ("arbitrary" / reduction)
    nk = pl.num_programs(2)

    @pl.when(j == 0)
    def _init():
        m_sc[...] = jnp.full_like(m_sc[...], -jnp.inf)
        l_sc[...] = jnp.zeros_like(l_sc[...])
        acc_sc[...] = jnp.zeros_like(acc_sc[...])

    def _update(apply_mask):
        q = qp_ref[...]                              # (Tq, Dk) already scaled
        k = kp_ref[...]                              # (Tk, Dk)
        # NT matmul: contract last dims directly (no in-kernel transpose).
        s = lax.dot_general(q, k, (((1,), (1,)), ((), ())),
                            preferred_element_type=jnp.float32)   # (Tq, Tk)
        if apply_mask:                               # diagonal tile only
            tq, tk = s.shape
            row = lax.broadcasted_iota(jnp.int32, (tq, tk), 0)
            col = lax.broadcasted_iota(jnp.int32, (tq, tk), 1)
            s = jnp.where(col > row, -jnp.inf, s)
        m_prev = m_sc[...]
        m_new = jnp.maximum(m_prev, jnp.max(s, axis=-1, keepdims=True))
        alpha = jnp.exp(m_prev - m_new)
        p = jnp.exp(s - m_new)
        l_sc[...] = alpha * l_sc[...] + jnp.sum(p, axis=-1, keepdims=True)
        acc_sc[...] = alpha * acc_sc[...] + jnp.dot(
            p.astype(vp_ref.dtype), vp_ref[...],
            preferred_element_type=jnp.float32)
        m_sc[...] = m_new

    @pl.when(j < i)                 # strictly-lower tile: no mask needed
    def _off_diag():
        _update(apply_mask=False)

    @pl.when(j == i)                # diagonal tile: apply the causal mask
    def _diag():
        _update(apply_mask=True)

    # kv tiles with j > i are skipped entirely (causal); their kv index_map is
    # clamped to i in the wrapper so no new K/V DMA is issued for them.

    @pl.when(j == nk - 1)
    def _finalize():
        inv = pl.reciprocal(l_sc[...], approx=True)   # EUP reciprocal, ~free
        o_ref[...] = (acc_sc[...] * inv).astype(o_ref.dtype)


# ---------------------------------------------------------------------------
# Wrapper
# ---------------------------------------------------------------------------
def single_head_attention(q, k, v, wq, wk, wv, *, block=256,
                          compute_dtype=None,
                          vmem_limit_bytes=32 * 1024 * 1024):
    """q, k, v: (B, S, model_dim); wq/wk/wv: (kdim, model_dim) in torch
    nn.Linear layout (y = x @ W.T, no bias). Returns (B, S, kdim)."""
    B, S, D = q.shape
    kdim = wq.shape[0]
    out_dtype = q.dtype
    cdt = jnp.dtype(compute_dtype) if compute_dtype is not None else q.dtype

    # ---- layout plumbing in the wrapper (free): tiles & zero padding -------
    block = max(8, _round_up(block, 8))
    s8 = _round_up(S, 8)
    t = s8 if s8 <= block else block           # one tile size for q and kv
    s_pad = _round_up(S, t)
    dk_pad = _round_up(kdim, 128)              # lane-dense output / MXU N-dim

    scale = 1.0 / float(kdim) ** 0.5

    def _prep_w(w, s_):
        # pre-transpose to (D, kdim), fold scale, zero-pad kdim -> dk_pad.
        wt = (w.astype(jnp.float32) * s_).T
        wt = jnp.pad(wt, ((0, 0), (0, dk_pad - kdim)))
        return wt.astype(cdt)

    wq_t, wk_t, wv_t = _prep_w(wq, scale), _prep_w(wk, 1.0), _prep_w(wv, 1.0)

    def _prep_x(x):
        x = x.astype(cdt)
        if s_pad != S:
            # Padded keys are always "in the future" of real queries, so the
            # causal mask neutralizes them; padded query rows are sliced off.
            x = jnp.pad(x, ((0, 0), (0, s_pad - S), (0, 0)))
        return x

    qx, kx, vx = _prep_x(q), _prep_x(k), _prep_x(v)
    nq = s_pad // t

    # ---- pass 1: projections ------------------------------------------------
    x_spec = pl.BlockSpec((None, t, D), lambda b, i: (b, i, 0))
    w_spec = pl.BlockSpec((D, dk_pad), lambda b, i: (0, 0))
    p_spec = pl.BlockSpec((None, t, dk_pad), lambda b, i: (b, i, 0))

    qp, kp, vp = pl.pallas_call(
        _proj_kernel,
        out_shape=[jax.ShapeDtypeStruct((B, s_pad, dk_pad), cdt)] * 3,
        grid_spec=pltpu.PrefetchScalarGridSpec(
            num_scalar_prefetch=0,
            grid=(B, nq),
            in_specs=[x_spec, x_spec, x_spec, w_spec, w_spec, w_spec],
            out_specs=[p_spec, p_spec, p_spec],
        ),
        compiler_params=pltpu.CompilerParams(
            dimension_semantics=("parallel", "parallel"),
            vmem_limit_bytes=vmem_limit_bytes,
        ),
    )(qx, kx, vx, wq_t, wk_t, wv_t)

    # ---- pass 2: causal flash attention -------------------------------------
    q_spec = pl.BlockSpec((None, t, dk_pad), lambda b, i, j: (b, i, 0))
    # Clamp the kv block index at the diagonal: tiles above it are never used,
    # and keeping the index constant there elides their DMAs.
    kv_spec = pl.BlockSpec((None, t, dk_pad),
                           lambda b, i, j: (b, jnp.minimum(j, i), 0))
    o_spec = pl.BlockSpec((None, t, dk_pad), lambda b, i, j: (b, i, 0))

    out = pl.pallas_call(
        _flash_attn_kernel,
        out_shape=jax.ShapeDtypeStruct((B, s_pad, dk_pad), out_dtype),
        grid_spec=pltpu.PrefetchScalarGridSpec(
            num_scalar_prefetch=0,
            grid=(B, nq, nq),
            in_specs=[q_spec, kv_spec, kv_spec],
            out_specs=o_spec,
            scratch_shapes=[
                pltpu.VMEM((t, 1), jnp.float32),       # running max  m
                pltpu.VMEM((t, 1), jnp.float32),       # running sum  l
                pltpu.VMEM((t, dk_pad), jnp.float32),  # f32 accumulator
            ],
        ),
        compiler_params=pltpu.CompilerParams(
            dimension_semantics=("parallel", "parallel", "arbitrary"),
            vmem_limit_bytes=vmem_limit_bytes,
        ),
    )(qp, kp, vp)

    return out[:, :S, :kdim]


# ---------------------------------------------------------------------------
# Pure-JAX reference mirroring the PyTorch forward
# ---------------------------------------------------------------------------
def reference(q, k, v, wq, wk, wv):
    kdim = wq.shape[0]
    qp = q @ wq.T
    kp = k @ wk.T
    vp = v @ wv.T
    scores = jnp.einsum("bik,bjk->bij", qp, kp) / jnp.sqrt(jnp.float32(kdim))
    S = scores.shape[1]
    mask = jnp.arange(S)[None, :] > jnp.arange(S)[:, None]
    scores = jnp.where(mask[None, :, :], -jnp.inf, scores)
    attn = jax.nn.softmax(scores, axis=-1)
    return jnp.einsum("bij,bjk->bik", attn, vp)


if __name__ == "__main__":
    base_key = jax.random.PRNGKey(0)

    def _case(B, S, model_dim, kdim, block):
        kq, kk, kv_, kwq, kwk, kwv = jax.random.split(
            jax.random.fold_in(base_key, S), 6)
        q = jax.random.normal(kq, (B, S, model_dim), dtype=jnp.float32)
        k = jax.random.normal(kk, (B, S, model_dim), dtype=jnp.float32)
        v = jax.random.normal(kv_, (B, S, model_dim), dtype=jnp.float32)
        bound = 1.0 / jnp.sqrt(jnp.float32(model_dim))
        wq = jax.random.uniform(kwq, (kdim, model_dim), jnp.float32, -bound, bound)
        wk = jax.random.uniform(kwk, (kdim, model_dim), jnp.float32, -bound, bound)
        wv = jax.random.uniform(kwv, (kdim, model_dim), jnp.float32, -bound, bound)

        out = jax.block_until_ready(
            single_head_attention(q, k, v, wq, wk, wv, block=block))
        ref = reference(q, k, v, wq, wk, wv)
        assert out.shape == (B, S, kdim)
        # approx reciprocal (EUP) + online softmax -> slightly looser than 1e-4
        err = float(jnp.max(jnp.abs(out - ref)))
        assert jnp.allclose(out, ref, atol=2e-3, rtol=2e-3), err

    # Small shape matching the module spec.
    _case(B=2, S=8, model_dim=32, kdim=16, block=256)
    # Multi-tile path: exercises causal tile skipping, the clamped kv index
    # map, and sequence padding (S=40 -> padded to 48 with 16-wide tiles).
    _case(B=2, S=40, model_dim=32, kdim=16, block=16)

    print("KERNEL_OK")
</pallas_src>

<mosaic_0001>
module attributes {stable_mosaic.version = 11 : i64} {
  func.func @_proj_kernel(%arg0: i32, %arg1: i32, %arg2: memref<1x8x32xf32, #tpu.memory_space<vmem>>, %arg3: memref<1x8x32xf32, #tpu.memory_space<vmem>>, %arg4: memref<1x8x32xf32, #tpu.memory_space<vmem>>, %arg5: memref<32x128xf32, #tpu.memory_space<vmem>>, %arg6: memref<32x128xf32, #tpu.memory_space<vmem>>, %arg7: memref<32x128xf32, #tpu.memory_space<vmem>>, %arg8: memref<1x8x128xf32, #tpu.memory_space<vmem>>, %arg9: memref<1x8x128xf32, #tpu.memory_space<vmem>>, %arg10: memref<1x8x128xf32, #tpu.memory_space<vmem>>) attributes {dimension_semantics = [#tpu.dimension_semantics<parallel>, #tpu.dimension_semantics<parallel>], iteration_bounds = array<i64: 2, 1>, scalar_prefetch = 0 : i64, scratch_operands = 0 : i64, tpu.core_type = #tpu.core_type<tc>, window_params = [{transform_indices = @transform_0, window_bounds = array<i64: 1, 8, 32>}, {transform_indices = @transform_1, window_bounds = array<i64: 1, 8, 32>}, {transform_indices = @transform_2, window_bounds = array<i64: 1, 8, 32>}, {pipeline_mode = #tpu.pipeline_mode<synchronous>, transform_indices = @transform_3, window_bounds = array<i64: 32, 128>}, {pipeline_mode = #tpu.pipeline_mode<synchronous>, transform_indices = @transform_4, window_bounds = array<i64: 32, 128>}, {pipeline_mode = #tpu.pipeline_mode<synchronous>, transform_indices = @transform_5, window_bounds = array<i64: 32, 128>}, {transform_indices = @transform_6, window_bounds = array<i64: 1, 8, 128>}, {transform_indices = @transform_7, window_bounds = array<i64: 1, 8, 128>}, {transform_indices = @transform_8, window_bounds = array<i64: 1, 8, 128>}]} {
    %c0 = arith.constant 0 : index
    %c0_0 = arith.constant 0 : index
    %c0_1 = arith.constant 0 : index
    %0 = vector.load %arg2[%c0, %c0_0, %c0_1] : memref<1x8x32xf32, #tpu.memory_space<vmem>>, vector<1x8x32xf32>
    %1 = vector.shape_cast %0 : vector<1x8x32xf32> to vector<8x32xf32>
    %c0_2 = arith.constant 0 : index
    %c0_3 = arith.constant 0 : index
    %2 = vector.load %arg5[%c0_2, %c0_3] : memref<32x128xf32, #tpu.memory_space<vmem>>, vector<32x128xf32>
    %cst = arith.constant dense<0.000000e+00> : vector<8x128xf32>
    %3 = tpu.matmul %1, %2, %cst {dimension_numbers = #tpu.dot_dimension_numbers<[1], [0], [0], [1], [0, 0, 1, 1], [], []>} : vector<8x32xf32>, vector<32x128xf32>, vector<8x128xf32> -> vector<8x128xf32>
    %c0_4 = arith.constant 0 : index
    %c0_5 = arith.constant 0 : index
    %c0_6 = arith.constant 0 : index
    %4 = vector.load %arg8[%c0_4, %c0_5, %c0_6] : memref<1x8x128xf32, #tpu.memory_space<vmem>>, vector<1x8x128xf32>
    %5 = vector.shape_cast %4 : vector<1x8x128xf32> to vector<8x128xf32>
    %6 = vector.shape_cast %3 : vector<8x128xf32> to vector<1x8x128xf32>
    tpu.vector_store %arg8[%c0_4, %c0_5, %c0_6], %6 {strides = array<i32>} : memref<1x8x128xf32, #tpu.memory_space<vmem>>, vector<1x8x128xf32>,
    %c0_7 = arith.constant 0 : index
    %c0_8 = arith.constant 0 : index
    %c0_9 = arith.constant 0 : index
    %7 = vector.load %arg3[%c0_7, %c0_8, %c0_9] : memref<1x8x32xf32, #tpu.memory_space<vmem>>, vector<1x8x32xf32>
    %8 = vector.shape_cast %7 : vector<1x8x32xf32> to vector<8x32xf32>
    %c0_10 = arith.constant 0 : index
    %c0_11 = arith.constant 0 : index
    %9 = vector.load %arg6[%c0_10, %c0_11] : memref<32x128xf32, #tpu.memory_space<vmem>>, vector<32x128xf32>
    %cst_12 = arith.constant dense<0.000000e+00> : vector<8x128xf32>
    %10 = tpu.matmul %8, %9, %cst_12 {dimension_numbers = #tpu.dot_dimension_numbers<[1], [0], [0], [1], [0, 0, 1, 1], [], []>} : vector<8x32xf32>, vector<32x128xf32>, vector<8x128xf32> -> vector<8x128xf32>
    %c0_13 = arith.constant 0 : index
    %c0_14 = arith.constant 0 : index
    %c0_15 = arith.constant 0 : index
    %11 = vector.load %arg9[%c0_13, %c0_14, %c0_15] : memref<1x8x128xf32, #tpu.memory_space<vmem>>, vector<1x8x128xf32>
    %12 = vector.shape_cast %11 : vector<1x8x128xf32> to vector<8x128xf32>
    %13 = vector.shape_cast %10 : vector<8x128xf32> to vector<1x8x128xf32>
    tpu.vector_store %arg9[%c0_13, %c0_14, %c0_15], %13 {strides = array<i32>} : memref<1x8x128xf32, #tpu.memory_space<vmem>>, vector<1x8x128xf32>,
    %c0_16 = arith.constant 0 : index
    %c0_17 = arith.constant 0 : index
    %c0_18 = arith.constant 0 : index
    %14 = vector.load %arg4[%c0_16, %c0_17, %c0_18] : memref<1x8x32xf32, #tpu.memory_space<vmem>>, vector<1x8x32xf32>
    %15 = vector.shape_cast %14 : vector<1x8x32xf32> to vector<8x32xf32>
    %c0_19 = arith.constant 0 : index
    %c0_20 = arith.constant 0 : index
    %16 = vector.load %arg7[%c0_19, %c0_20] : memref<32x128xf32, #tpu.memory_space<vmem>>, vector<32x128xf32>
    %cst_21 = arith.constant dense<0.000000e+00> : vector<8x128xf32>
    %17 = tpu.matmul %15, %16, %cst_21 {dimension_numbers = #tpu.dot_dimension_numbers<[1], [0], [0], [1], [0, 0, 1, 1], [], []>} : vector<8x32xf32>, vector<32x128xf32>, vector<8x128xf32> -> vector<8x128xf32>
    %c0_22 = arith.constant 0 : index
    %c0_23 = arith.constant 0 : index
    %c0_24 = arith.constant 0 : index
    %18 = vector.load %arg10[%c0_22, %c0_23, %c0_24] : memref<1x8x128xf32, #tpu.memory_space<vmem>>, vector<1x8x128xf32>
    %19 = vector.shape_cast %18 : vector<1x8x128xf32> to vector<8x128xf32>
    %20 = vector.shape_cast %17 : vector<8x128xf32> to vector<1x8x128xf32>
    tpu.vector_store %arg10[%c0_22, %c0_23, %c0_24], %20 {strides = array<i32>} : memref<1x8x128xf32, #tpu.memory_space<vmem>>, vector<1x8x128xf32>,
    return
  }
  func.func @transform_0(%arg0: i32, %arg1: i32) -> (i32, i32, i32) {
    %c0_i32 = arith.constant 0 : i32
    %c0_i32_0 = arith.constant 0 : i32
    return %arg0, %arg1, %c0_i32 : i32, i32, i32
  }
  func.func @transform_1(%arg0: i32, %arg1: i32) -> (i32, i32, i32) {
    %c0_i32 = arith.constant 0 : i32
    %c0_i32_0 = arith.constant 0 : i32
    return %arg0, %arg1, %c0_i32 : i32, i32, i32
  }
  func.func @transform_2(%arg0: i32, %arg1: i32) -> (i32, i32, i32) {
    %c0_i32 = arith.constant 0 : i32
    %c0_i32_0 = arith.constant 0 : i32
    return %arg0, %arg1, %c0_i32 : i32, i32, i32
  }
  func.func @transform_3(%arg0: i32, %arg1: i32) -> (i32, i32) {
    %c0_i32 = arith.constant 0 : i32
    %c0_i32_0 = arith.constant 0 : i32
    %c0_i32_1 = arith.constant 0 : i32
    return %c0_i32, %c0_i32_0 : i32, i32
  }
  func.func @transform_4(%arg0: i32, %arg1: i32) -> (i32, i32) {
    %c0_i32 = arith.constant 0 : i32
    %c0_i32_0 = arith.constant 0 : i32
    %c0_i32_1 = arith.constant 0 : i32
    return %c0_i32, %c0_i32_0 : i32, i32
  }
  func.func @transform_5(%arg0: i32, %arg1: i32) -> (i32, i32) {
    %c0_i32 = arith.constant 0 : i32
    %c0_i32_0 = arith.constant 0 : i32
    %c0_i32_1 = arith.constant 0 : i32
    return %c0_i32, %c0_i32_0 : i32, i32
  }
  func.func @transform_6(%arg0: i32, %arg1: i32) -> (i32, i32, i32) {
    %c0_i32 = arith.constant 0 : i32
    %c0_i32_0 = arith.constant 0 : i32
    return %arg0, %arg1, %c0_i32 : i32, i32, i32
  }
  func.func @transform_7(%arg0: i32, %arg1: i32) -> (i32, i32, i32) {
    %c0_i32 = arith.constant 0 : i32
    %c0_i32_0 = arith.constant 0 : i32
    return %arg0, %arg1, %c0_i32 : i32, i32, i32
  }
  func.func @transform_8(%arg0: i32, %arg1: i32) -> (i32, i32, i32) {
    %c0_i32 = arith.constant 0 : i32
    %c0_i32_0 = arith.constant 0 : i32
    return %arg0, %arg1, %c0_i32 : i32, i32, i32
  }
}

</mosaic_0001>

<bundles_post_ra>
// kernel: tpu_custom_call.1
= control target key start
LH: loop header
LB: loop body
LE: loop exit
PB: predicated region body
PF: predicated region fallthrough
CT: control target
= control target key end

     0   :  { %s2020_s0 = inlined_call_operand.hbm [shape: f32[2,8,32], index: 0, kind: input, shape index: {}]   ;;  %s2021_s1 = inlined_call_operand.hbm [shape: f32[2,8,32], index: 1, kind: input, shape index: {}]   ;;  %s2022_s2 = inlined_call_operand.hbm [shape: f32[2,8,32], index: 2, kind: input, shape index: {}]   ;;  %s2023_s3 = inlined_call_operand.hbm [shape: f32[32,128], index: 3, kind: input, shape index: {}]   ;;  %s2024_s4 = inlined_call_operand.hbm [shape: f32[32,128], index: 4, kind: input, shape index: {}]   ;;  %s2025_s5 = inlined_call_operand.hbm [shape: f32[32,128], index: 5, kind: input, shape index: {}]   ;;  %s2026_s6 = inlined_call_operand.hbm [shape: f32[2,8,128], index: 6, kind: output, shape index: {0}]   ;;  %s2027_s7 = inlined_call_operand.hbm [shape: f32[2,8,128], index: 7, kind: output, shape index: {1}]   ;;  %s2028_s8 = inlined_call_operand.hbm [shape: f32[2,8,128], index: 8, kind: output, shape index: {2}]  }
   0x1   :  { %2058 = sst [smem:[#allocation30_spill]] %s2021_s1 }
   0x2   :  { %2059 = sst [smem:[#allocation31_spill]] %s2023_s3 }
   0x3   :  { %2060 = sst [smem:[#allocation32_spill]] %s2026_s6 }
   0x4   :  { %2061 = sst [smem:[#allocation33_spill]] %s2027_s7 }
   0x5   :  { %2062 = sst [smem:[#allocation34_spill]] %s2028_s8 }
   0x6   :  { %14 = vsyncpa [#allocation3], 0 }
   0x7   :  { %16 = vsyncpa [#allocation3 + $0x1], 0 }
   0x8   :  { %17 = vsyncpa [#allocation6], 0 }
   0x9   :  { %19 = vsyncpa [#allocation6 + $0x1], 0 }
   0xa   :  { %20 = vsyncpa [#allocation9], 0 }
   0xb   :  { %21 = vsyncpa [#allocation12], 0 }
   0xc   :  { %22 = vsyncpa [#allocation4], 0 }
   0xd   :  { %24 = vsyncpa [#allocation4 + $0x1], 0 }
   0xe   :  { %25 = vsyncpa [#allocation15], 0 }
   0xf   :  { %27 = vsyncpa [#allocation15 + $0x1], 0  ;;  %s1596_s27 = smov 0   ;;  %s1598_s28 = smov 0  }
  0x10   :  { %s1600_s29 = smov 0   ;;  %s1602_s30 = smov 0  }
  0x11   :  { %s1604_s9 = smov 0   ;;  %s1606_s10 = smov 0  }
  0x12 LB: > { %2063 = sst [smem:[#allocation23_spill]] %s1515_s27  ;;  %s1627_s11 = sadd.s32 4294967295, %s1535_s10   ;;  %s1535_s10 = sphi %s1606_s10, %s33_s10   ;;  %s1531_s9 = sphi %s1604_s9, %s2108_s9   ;;  %s1527_s30 = sphi %s1602_s30, %s2107_s30   ;;  %s1523_s29 = sphi %s1600_s29, %s2111_s29   ;;  %s1519_s28 = sphi %s1598_s28, %s2110_s28   ;;  %s1515_s27 = sphi %s1596_s27, %s2109_s27  }
  0x13   : > { %2064 = sst [smem:[#allocation24_spill]] %s1531_s9  ;;  %s2032_s12 = sadd.s32 4294967294, %s1535_s10  }
  0x14   : > { %2065 = sst [smem:[#allocation25_spill]] %s1535_s10  ;;  %p67_p0 = scmp.ne.s32.totalorder %s1519_s28, %s1515_s27 }
  0x15   : > { %p2029_p1 = scmp.eq.s32.totalorder %s1627_s11, 0  ;;  %p218_p3 = scmp.eq.s32.totalorder %s2032_s12, 1 }
  0x16   : > { %p991_p5 = scmp.ge.s32.totalorder %s1535_s10, 1  ;;  %p281_p7 = scmp.lt.s32.totalorder %s1535_s10, 3 }
  0x17   : > { %p1638_p4 = por %p2029_p1, %p67_p0  ;;  %p1643_p6 = por %p218_p3, %p67_p0 }
  0x18   : > { %p1648_p8 = pnand %p991_p5, %p281_p7  ;;  %s1537_s16 = smov [#allocation8]  }
  0x19   : > { %s2066_s13 = scalar_select %p1638_p4, 1, 0 }
  0x1a   : > { %s2067_s14 = scalar_select %p1643_p6, 1, 0 }
  0x1b   : > { %s2069_s15 = scalar_select %p1648_p8, 1, 0 }
  0x1c   : > { %2068 = sst [smem:[#allocation26_spill]] %s2067_s14  ;;  %s293_s17 = sshll.u32 %s1537_s16, 4  ;;  %s294_s17 = int_to_ptr.vmem [resolvable:$true] %s293_s17 }
  0x1d   : > { %p1113_p9 = pneg %p1648_p8  ;;  %s45_s19 = sadd.s32 1, %s1531_s9 }
  0x1e   : > { %s2071_s3 = sld [smem:[#allocation31_spill]] }
  0x1f   : > { %p1657_p11 = pnand %p1113_p9, %p2029_p1 }
  0x21   : > { %s2070_s18 = scalar_select %p1657_p11, 1, 0 }
  0x22   : > { %p1670_p13 = pneg %p1657_p11 }
  0x24   : > { %s1207_s22 = scalar_lea.hbm %s2071_s3, 512 }
  0x25   : > { %p1208_p12 = scmp.ne.s32.totalorder %s2071_s3, %s1207_s22  ;;  %p1214_p5 = scmp.lt.u32.totalorder %s1207_s22, %s2071_s3 }
  0x26   : > { %s2072_s25 = scalar_select %p1670_p13, 1, 0 }
  0x27   : > { %p1210_p0 = pnand %p1670_p13, %p1208_p12 }
  0x29   : > { %p1211_p3 = pneg %p1210_p0 }
  0x2b   : > { %p1216_p7 = pnand %p1214_p5, %p1211_p3 }
  0x2d   : > { %1219 = shalt.err (!%p1216_p7)
}
  0x2e   : > { %s1220_s20 = scalar_lea.vmem %s294_s17, 512  ;;  %p1228_p2 = scmp.lt.s32.totalorder %s294_s17, %s294_s17 }
  0x2f   : > { %p1221_p9 = scmp.ne.s32.totalorder %s294_s17, %s1220_s20  ;;  %p1229_p6 = scmp.lt.s32.totalorder %s1220_s20, %s1220_s20 }
  0x31   : > { %p1223_p10 = pnand %p1221_p9, %p1670_p13  ;;  %p1230_p4 = por %p1229_p6, %p1228_p2 }
  0x33   : > { %p1224_p1 = pneg %p1223_p10 }
  0x35   : > { %p1231_p8 = pnand %p1230_p4, %p1224_p1 }
  0x37   : > { %1234 = shalt.err (!%p1231_p8)
}
  0x38   : > { %s2033_s21 = smov 128   ;;  %s2035_s22 = smov 8  }
  0x39   : > { %1116 = dma.hbm_to_vmem [thread:$0]  (!%p1657_p11), %s2071_s3, 512, %s294_s17, [#allocation9], %s2033_s21, %s2033_s21, %s2035_s22  }
  0x3a   : > { %p47_p1 = scmp.ge.s32.totalorder %s45_s19, 2  ;;  %s54_s26 = sadd.s32 1, %s1523_s29 }
  0x3b   : > { %p61_p2 = scmp.ne.s32.totalorder %s1523_s29, %s1519_s28  ;;  %p62_p4 = scmp.eq.s32.totalorder %s1535_s10, 0 }
  0x3c   : > { %s2113_s19 = smov (%p47_p1, %s45_s19), 0  ;;  %p2074_p8 = scmp.eq.s32.totalorder %s1627_s11, 1 }
  0x3d   : > { %2073 = sst [smem:[#allocation27_spill]] %s2113_s19  ;;  %p63_p6 = por %p62_p4, %p61_p2 }
  0x3e   : > { %p1697_p10 = por %p2074_p8, %p61_p2  ;;  %s49_s20 = ssub.s32 %s1531_s9, %s2113_s19 }
  0x3f   : > { %p1146_p12 = scmp.lt.s32.totalorder %s1535_s10, 2  ;;  %p52_p0 = scmp.eq.s32.totalorder %s49_s20, 0 }
  0x40   : > { %s2075_s16 = scalar_select %p1697_p10, 1, 0 }
  0x41   : > { %s2038_s12 = sand.u32 1, %s1523_s29   ;;  %s1710_s23 = sshll.u32 %s1531_s9, 7 }
  0x42   : > { %2076 = sst [smem:[#allocation28_spill]] %s2075_s16  ;;  %s1707_s17 = sshll.u32 %s2038_s12, 3 }
  0x43   : > { %s1713_s24 = scalar_select %p52_p0, %s1523_s29, %s54_s26  }
  0x44   : > { %p1715_p3 = pnand %p1146_p12, %p63_p6  ;;  %s352_s22 = sand.u32 1, %s1535_s10  }
  0x45   : > { %2077 = sst [smem:[#allocation29_spill]] %s1713_s24  ;;  %s2079_s1 = sld [smem:[#allocation30_spill]] }
  0x46   : > { %s2078_s21 = scalar_select %p1715_p3, 1, 0 }
  0x47   : > { %s356_s12 = scalar_lea.vmem [#allocation5], %s1707_s17  ;;  %s1540_s26 = smov [#allocation10]  }
  0x48   : > { %s364_s9 = sshll.u32 %s356_s12, 4  ;;  %s1729_s24 = sshll.u32 %s1540_s26, 4  ;;  %s1727_s9 = int_to_ptr.vmem [resolvable:$true] %s364_s9  ;;  %s307_s24 = int_to_ptr.vmem [resolvable:$true] %s1729_s24 }
  0x49   : > { %s1731_s14 = scalar_lea.sflag [#allocation6], %s352_s22  ;;  %p1737_p7 = pneg %p1715_p3 }
  0x4b   : > { %s1724_s20 = scalar_lea.hbm %s2079_s1, %s1710_s23  ;;  %s1240_s10 = scalar_lea.hbm %s2079_s1, 256 }
  0x4c   : > { %s1235_s27 = scalar_lea.hbm %s1724_s20, 128  ;;  %p1241_p2 = scmp.lt.u32.totalorder %s1724_s20, %s2079_s1 }
  0x4d   : > { %p1236_p5 = scmp.ne.s32.totalorder %s1724_s20, %s1235_s27  ;;  %p1242_p4 = scmp.lt.u32.totalorder %s1240_s10, %s1235_s27 }
  0x4e   : > { %s2080_s3 = scalar_select %p1737_p7, 1, 0 }
  0x4f   : > { %p1238_p9 = pnand %p1737_p7, %p1236_p5  ;;  %p1243_p6 = por %p1242_p4, %p1241_p2 }
  0x50   : > { %p1244_p8 = scmp.lt.u32.totalorder %s1235_s27, %s1724_s20 }
  0x51   : > { %p1239_p1 = pneg %p1238_p9 }
  0x52   : > { %p1245_p12 = por %p1244_p8, %p1243_p6 }
  0x54   : > { %p1246_p0 = pnand %p1245_p12, %p1239_p1 }
  0x56   : > { %1249 = shalt.err (!%p1246_p0)
}
  0x57   : > { %s1250_s22 = scalar_lea.vmem %s1727_s9, 128  ;;  %s1541_s19 = smov [#allocation5]  }
  0x58   : > { %p1251_p5 = scmp.ne.s32.totalorder %s1727_s9, %s1250_s22  ;;  %s1255_s12 = sshll.u32 %s1541_s19, 4  ;;  %s1256_s12 = int_to_ptr.vmem [resolvable:$false] %s1255_s12 }
  0x59   : > { %s1257_s8 = scalar_lea.vmem %s1256_s12, 256  ;;  %p1258_p11 = scmp.lt.s32.totalorder %s1727_s9, %s1256_s12 }
  0x5a   : > { %p1253_p9 = pnand %p1251_p5, %p1737_p7  ;;  %p1259_p13 = scmp.lt.s32.totalorder %s1257_s8, %s1250_s22 }
  0x5c   : > { %p1254_p10 = pneg %p1253_p9  ;;  %p1260_p2 = por %p1259_p13, %p1258_p11 }
  0x5e   : > { %p1261_p4 = pnand %p1260_p2, %p1254_p10 }
  0x60   : > { %1264 = shalt.err (!%p1261_p4)
}
  0x61   : > { %1129 = dma.hbm_to_vmem [thread:$0]  (!%p1715_p3), %s1724_s20, 128, %s1727_s9, %s1731_s14  }
  0x62   : > { %s1265_s26 = scalar_lea.hbm %s2024_s4, 512  ;;  %p2081_p11 = scmp.ne.s32.totalorder %s2072_s25, 0 }
  0x63   : > { %p1266_p1 = scmp.ne.s32.totalorder %s2024_s4, %s1265_s26  ;;  %p1272_p6 = scmp.lt.u32.totalorder %s1265_s26, %s2024_s4 }
  0x65   : > { %p1268_p13 = pnand %p1266_p1, %p2081_p11 }
  0x67   : > { %p1269_p10 = pneg %p1268_p13 }
  0x69   : > { %p1274_p8 = pnand %p1272_p6, %p1269_p10 }
  0x6b   : > { %1277 = shalt.err (!%p1274_p8)
}
  0x6c   : > { %s1278_s8 = scalar_lea.vmem %s307_s24, 512  ;;  %p1286_p9 = scmp.lt.s32.totalorder %s307_s24, %s307_s24 }
  0x6d   : > { %p1279_p12 = scmp.ne.s32.totalorder %s307_s24, %s1278_s8  ;;  %p1287_p2 = scmp.lt.s32.totalorder %s1278_s8, %s1278_s8 }
  0x6f   : > { %p1281_p0 = pnand %p1279_p12, %p2081_p11  ;;  %p1288_p4 = por %p1287_p2, %p1286_p9 }
  0x71   : > { %p1282_p5 = pneg %p1281_p0 }
  0x73   : > { %p1289_p3 = pnand %p1288_p4, %p1282_p5 }
  0x75   : > { %1292 = shalt.err (!%p1289_p3)
}
  0x76   : > { %p2082_p1 = scmp.ne.s32.totalorder %s2070_s18, 0  ;;  %s2083_s1 = smov 8  }
  0x77   : > { %s2084_s9 = smov 128   ;;  %s1542_s10 = smov [#allocation11]  }
  0x78   : > { %1119 = dma.hbm_to_vmem [thread:$0]  (!%p2082_p1), %s2024_s4, 512, %s307_s24, [#allocation9], %s2084_s9, %s2084_s9, %s2083_s1  }
  0x79   : > { %s319_s26 = sshll.u32 %s1542_s10, 4  ;;  %s1293_s12 = scalar_lea.hbm %s2025_s5, 512  ;;  %s320_s26 = int_to_ptr.vmem [resolvable:$true] %s319_s26 }
  0x7a   : > { %p1294_p3 = scmp.ne.s32.totalorder %s2025_s5, %s1293_s12  ;;  %p1300_p6 = scmp.lt.u32.totalorder %s1293_s12, %s2025_s5 }
  0x7c   : > { %p1296_p13 = pnand %p1294_p3, %p2081_p11 }
  0x7e   : > { %p1297_p10 = pneg %p1296_p13 }
  0x80   : > { %p1302_p8 = pnand %p1300_p6, %p1297_p10 }
  0x82   : > { %1305 = shalt.err (!%p1302_p8)
}
  0x83   : > { %s1306_s24 = scalar_lea.vmem %s320_s26, 512  ;;  %p1314_p9 = scmp.lt.s32.totalorder %s320_s26, %s320_s26 }
  0x84   : > { %p1307_p12 = scmp.ne.s32.totalorder %s320_s26, %s1306_s24  ;;  %p1315_p2 = scmp.lt.s32.totalorder %s1306_s24, %s1306_s24 }
  0x86   : > { %p1309_p0 = pnand %p1307_p12, %p2081_p11  ;;  %p1316_p4 = por %p1315_p2, %p1314_p9 }
  0x88   : > { %p1310_p5 = pneg %p1309_p0 }
  0x8a   : > { %p1317_p7 = pnand %p1316_p4, %p1310_p5 }
  0x8c   : > { %1320 = shalt.err (!%p1317_p7)
}
  0x8d   : > { %1122 = dma.hbm_to_vmem [thread:$0]  (!%p2082_p1), %s2025_s5, 512, %s320_s26, [#allocation12], %s2084_s9, %s2084_s9, %s2083_s1  }
  0x8e   : > { %s1808_s20 = scalar_lea.hbm %s2020_s0, %s1710_s23  ;;  %s337_s18 = scalar_lea.vmem [#allocation2], %s1707_s17 }
  0x8f   : > { %s345_s27 = sshll.u32 %s337_s18, 4  ;;  %s2085_s10 = sand.u32 1, %s1523_s29   ;;  %s346_s27 = int_to_ptr.vmem [resolvable:$true] %s345_s27 }
  0x90   : > { %s334_s19 = scalar_lea.sflag [#allocation3], %s2085_s10  ;;  %s1321_s22 = scalar_lea.hbm %s1808_s20, 128 }
  0x91   : > { %p1322_p7 = scmp.ne.s32.totalorder %s1808_s20, %s1321_s22  ;;  %p2086_p11 = scmp.ne.s32.totalorder %s2080_s3, 0 }
  0x92   : > { %s1326_s26 = scalar_lea.hbm %s2020_s0, 256  ;;  %p1327_p1 = scmp.lt.u32.totalorder %s1808_s20, %s2020_s0 }
  0x93   : > { %p1324_p3 = pnand %p1322_p7, %p2086_p11  ;;  %p1328_p10 = scmp.lt.u32.totalorder %s1326_s26, %s1321_s22 }
  0x94   : > { %p1330_p8 = scmp.lt.u32.totalorder %s1321_s22, %s1808_s20 }
  0x95   : > { %p1325_p13 = pneg %p1324_p3  ;;  %p1329_p6 = por %p1328_p10, %p1327_p1 }
  0x97   : > { %p1331_p12 = por %p1330_p8, %p1329_p6 }
  0x99   : > { %p1332_p0 = pnand %p1331_p12, %p1325_p13 }
  0x9b   : > { %1335 = shalt.err (!%p1332_p0)
}
  0x9c   : > { %s1336_s24 = scalar_lea.vmem %s346_s27, 128  ;;  %s1543_s6 = smov [#allocation2]  }
  0x9d   : > { %p1337_p5 = scmp.ne.s32.totalorder %s346_s27, %s1336_s24  ;;  %s1341_s7 = sshll.u32 %s1543_s6, 4  ;;  %s1342_s7 = int_to_ptr.vmem [resolvable:$false] %s1341_s7 }
  0x9e   : > { %s1343_s25 = scalar_lea.vmem %s1342_s7, 256  ;;  %p1344_p4 = scmp.lt.s32.totalorder %s346_s27, %s1342_s7 }
  0x9f   : > { %p1339_p9 = pnand %p1337_p5, %p2086_p11  ;;  %p1345_p7 = scmp.lt.s32.totalorder %s1343_s25, %s1336_s24 }
  0xa1   : > { %p1340_p2 = pneg %p1339_p9  ;;  %p1346_p3 = por %p1345_p7, %p1344_p4 }
  0xa3   : > { %p1347_p1 = pnand %p1346_p3, %p1340_p2 }
  0xa5   : > { %1350 = shalt.err (!%p1347_p1)
}
  0xa6   : > { %p2087_p10 = scmp.ne.s32.totalorder %s2078_s21, 0  ;;  %s1834_s10 = scalar_lea.hbm %s2022_s2, %s1710_s23 }
  0xa7   : > { %s375_s22 = scalar_lea.vmem [#allocation7], %s1707_s17  ;;  %s1351_s9 = scalar_lea.hbm %s1834_s10, 128 }
  0xa8   : > { %1126 = dma.hbm_to_vmem [thread:$0]  (!%p2087_p10), %s1808_s20, 128, %s346_s27, %s334_s19  }
  0xa9   : > { %s383_s1 = sshll.u32 %s375_s22, 4  ;;  %p1352_p13 = scmp.ne.s32.totalorder %s1834_s10, %s1351_s9  ;;  %s384_s1 = int_to_ptr.vmem [resolvable:$true] %s383_s1 }
  0xaa   : > { %s1356_s20 = scalar_lea.hbm %s2022_s2, 256  ;;  %p1357_p12 = scmp.lt.u32.totalorder %s1834_s10, %s2022_s2 }
  0xab   : > { %p1354_p6 = pnand %p1352_p13, %p2086_p11  ;;  %p1358_p0 = scmp.lt.u32.totalorder %s1356_s20, %s1351_s9 }
  0xac   : > { %p1360_p9 = scmp.lt.u32.totalorder %s1351_s9, %s1834_s10 }
  0xad   : > { %p1355_p8 = pneg %p1354_p6  ;;  %p1359_p5 = por %p1358_p0, %p1357_p12 }
  0xaf   : > { %p1361_p2 = por %p1360_p9, %p1359_p5 }
  0xb1   : > { %p1362_p4 = pnand %p1361_p2, %p1355_p8 }
  0xb3   : > { %1365 = shalt.err (!%p1362_p4)
}
  0xb4   : > { %s1366_s17 = scalar_lea.vmem %s384_s1, 128  ;;  %s1544_s23 = smov [#allocation7]  }
  0xb5   : > { %p1367_p7 = scmp.ne.s32.totalorder %s384_s1, %s1366_s17  ;;  %s1371_s8 = sshll.u32 %s1544_s23, 4  ;;  %s1372_s8 = int_to_ptr.vmem [resolvable:$false] %s1371_s8 }
  0xb6   : > { %s1373_s24 = scalar_lea.vmem %s1372_s8, 256  ;;  %p1374_p13 = scmp.lt.s32.totalorder %s384_s1, %s1372_s8 }
  0xb7   : > { %p1369_p3 = pnand %p1367_p7, %p2086_p11  ;;  %p1375_p6 = scmp.lt.s32.totalorder %s1373_s24, %s1366_s17 }
  0xb9   : > { %p1370_p1 = pneg %p1369_p3  ;;  %p1376_p10 = por %p1375_p6, %p1374_p13 }
  0xbb   : > { %p1377_p0 = pnand %p1376_p10, %p1370_p1 }
  0xbd   : > { %1380 = shalt.err (!%p1377_p0)
}
  0xbe   : > { %p2088_p12 = scmp.ne.s32.totalorder %s2078_s21, 0  ;;  %p2089_p8 = scmp.ne.s32.totalorder %s2069_s15, 0 }
  0xbf   : > { %s1858_s3 = sand.u32 (!%p2089_p8), 1, %s1519_s28   ;;  %p2090_p11 = scmp.ne.s32.totalorder (!%p2089_p8), %s2066_s13, 0 }
  0xc0   : > { %1132 = dma.hbm_to_vmem [thread:$0]  (!%p2088_p12), %s1834_s10, 128, %s384_s1, %s1731_s14  }
  0xc1   : > { %392 = sbr.rel (%p2089_p8) target bundleno = 496 (0x1f0), region = 44  ;;  %s1861_s6 = sshll.u32 (!%p2089_p8), %s1858_s3, 3 }
  0xc2   : > { %s395_s7 = scalar_lea.sflag (!%p2089_p8), [#allocation3], %s1858_s3  ;;  %s398_s25 = scalar_lea.vmem (!%p2089_p8), [#allocation2], %s1861_s6 }
  0xc8   : > { %1490 = dma.done.wait (%p2090_p11), %s395_s7, 128  }
  0xc9   : > { %1492 = vsyncadd (%p2090_p11), %s395_s7, 4294967168  ;;  %s403_s14 = sand.u32 1, %s1627_s11   ;;  %s407_s21 = scalar_lea.vmem [#allocation5], %s1861_s6 }
  0xca   : > { %s404_s15 = scalar_lea.sflag [#allocation6], %s403_s14 }
  0xcb   : > { %1494 = dma.done.wait (%p2090_p11), %s404_s15, 256  }
  0xcc   : > { %1496 = vsyncadd (%p2090_p11), %s404_s15, 4294967040  ;;  %s416_s16 = scalar_lea.vmem [#allocation7], %s1861_s6  ;;  %p2091_p10 = scmp.eq.s32.totalorder %s1627_s11, 0 }
  0xce   : > { %1498 = dma.done.wait (%p2091_p10), [#allocation9], 1024   ;;  %p2092_p5 = pmov %p2091_p10 }
  0xd0   : > { %1500 = vsyncadd (%p2092_p5), [#allocation9], 4294966272  ;;  %p2093_p9 = pmov %p2092_p5 }
  0xd1   : > { %p2094_p2 = pmov %p2092_p5 }
  0xd2   : > { %1502 = dma.done.wait (%p2093_p9), [#allocation12], 512  }
  0xd3   : > { %1504 = vsyncadd (%p2094_p2), [#allocation12], 4294966784  ;;  %v1545_v0 = vmov 0.0|0.0   ;;  %vm1546_vm0 = vmmov 0   ;;  %v1547_v1 = vmov 0.0   ;;  %v482_v2 = vld [vmem:[#allocation8] sm:$0xff] }
  0xd4   : > { %1071 = vmatprep.subr.bf16.mxu0 %v1545_v0  ;;  %1077 = vmatprep.subr.bf16.mxu1 %v1545_v0  ;;  %v483_v3 = vld [vmem:[#allocation8 + $0x8] sm:$0xff]  ;;  %v484_v4 = vld [vmem:[#allocation8 + $0x10] sm:$0xff]  ;;  %v485_v6 = vld [vmem:[#allocation8 + $0x18] sm:$0xff]  ;;  %vm486_vm1 = vcmask 261120   ;;  %s466_s13 = scalar_lea.vmem [#allocation13], %s1861_s6  ;;  %s473_s10 = scalar_lea.vmem [#allocation14], %s1861_s6 }
  0xd5   : > { %1046 = vmatprep.mubr.msk.f32.mxu0 %vm1546_vm0, %v1547_v1  ;;  %1057 = vmatprep.mubr.msk.f32.mxu1 %vm1546_vm0, %v1547_v1  ;;  %v1072_v5 = vpack.c.bf16 %v483_v3, %v482_v2  ;;  %v562_v7 = vld [vmem:[#allocation10] sm:$0xff]  ;;  %v563_v8 = vld [vmem:[#allocation10 + $0x8] sm:$0xff]  ;;  %v1075_v10 = vpack.c.bf16 %v485_v6, %v484_v4  ;;  %v564_v11 = vld [vmem:[#allocation10 + $0x10] sm:$0xff]  ;;  %s744_s18 = sshll.u32 %s466_s13, 4  ;;  %s2095_s22 = sld [smem:[#allocation28_spill]]  ;;  %s1900_s18 = int_to_ptr.vmem [resolvable:$true] %s744_s18 }
  0xd6   : > { %v1078_v9 = vpack.c.bf16 %v563_v8, %v562_v7  ;;  %v565_v12 = vld [vmem:[#allocation10 + $0x18] sm:$0xff]  ;;  %v641_v13 = vld [vmem:[#allocation11] sm:$0xff]  ;;  %v642_v14 = vld [vmem:[#allocation11 + $0x8] sm:$0xff]  ;;  %s758_s1 = sshll.u32 %s473_s10, 4  ;;  %s1898_s9 = sshll.u32 %s1527_s30, 7  ;;  %s1902_s1 = int_to_ptr.vmem [resolvable:$true] %s758_s1 }
  0xd7   : > { %1073 = vmatpush3.bf16.msra.mxu0 %v1072_v5  ;;  %v1081_v15 = vpack.c.bf16 %v565_v12, %v564_v11  ;;  %v481_v16 = vld [vmem:[%s398_s25] sm:$0xff]  ;;  %v1084_v17 = vpack.c.bf16 %v642_v14, %v641_v13  ;;  %v561_v20 = vld [vmem:[%s407_s21] sm:$0xff]  ;;  %s2096_s20 = sld [smem:[#allocation32_spill]]  ;;  %s2097_s23 = sld [smem:[#allocation33_spill]] }
  0xd8   : > { %1074 = vmatprep.subr.bf16.mxu0 %v1545_v0  ;;  %1079 = vmatpush3.bf16.msra.mxu1 %v1078_v9  ;;  %v643_v18 = vld [vmem:[#allocation11 + $0x10] sm:$0xff]  ;;  %v644_v19 = vld [vmem:[#allocation11 + $0x18] sm:$0xff]  ;;  %s720_s8 = scalar_lea.sflag [#allocation4], %s1858_s3  ;;  %s1381_s24 = scalar_lea.vmem %s1900_s18, 128 }
  0xd9   : > { %1080 = vmatprep.subr.bf16.mxu1 %v1545_v0  ;;  %v1087_v21 = vpack.c.bf16 %v644_v19, %v643_v18  ;;  %v640_v22 = vld [vmem:[%s416_s16] sm:$0xff]  ;;  %p1382_p4 = scmp.ne.s32.totalorder %s1900_s18, %s1381_s24  ;;  %s1548_s7 = smov [#allocation13]  }
  0xda   : > { %s1385_s25 = sshll.u32 %s1548_s7, 4  ;;  %s1386_s25 = int_to_ptr.vmem [resolvable:$false] %s1385_s25 }
  0xdb   : > { %1076 = vmatpush3.bf16.msra.mxu0 %v1075_v10  ;;  %p2098_p7 = scmp.ne.s32.totalorder %s2095_s22, 0  ;;  %s1387_s15 = scalar_lea.vmem %s1386_s25, 256 }
  0xdc   : > { %1083 = vmatprep.subr.bf16.mxu0 %v1545_v0  ;;  %1082 = vmatpush3.bf16.msra.mxu1 %v1081_v15  ;;  %p1388_p13 = scmp.lt.s32.totalorder %s1900_s18, %s1386_s25  ;;  %p1389_p6 = scmp.lt.s32.totalorder %s1387_s15, %s1381_s24 }
  0xdd   : > { %s1908_s27 = scalar_lea.hbm %s2096_s20, %s1898_s9  ;;  %s1914_s30 = scalar_lea.hbm %s2097_s23, %s1898_s9 }
  0xde   : > { %1047 = vmatmul.mubr.msk.f32.vlgmr.msra.gmra.mrb[0].mxu0 %vm486_vm1, %v481_v16  ;;  %p1383_p3 = pnand %p1382_p4, %p2098_p7  ;;  %p1390_p0 = por %p1389_p6, %p1388_p13 }
  0xdf   : > { %1085 = vmatpush3.bf16.msra.mxu0 %v1084_v17  ;;  %1058 = vmatmul.mubr.msk.f32.vlgmr.msra.gmra.mrb[0].mxu1 %vm486_vm1, %v561_v20 }
  0xe0   : > { %1086 = vmatprep.subr.bf16.mxu0 %v1545_v0  ;;  %1068 = vmatprep.mubr.msk.f32.mxu0 %vm1546_vm0, %v1547_v1  ;;  %p1384_p1 = pneg %p1383_p3 }
  0xe2   : > { %p1391_p12 = pnand %p1390_p0, %p1384_p1 }
  0xe3   : > { %1088 = vmatpush3.bf16.msra.mxu0 %v1087_v21 }
  0xe6   : > { %1069 = vmatmul.mubr.msk.f32.vlgmr.msra.gmra.mrb[2].mxu0 %vm486_vm1, %v640_v22 }
 0x1b1   : > { %v556_v23 = vpop.f32.mrb[0].mxu0 }
 0x1b2   : > { %560 = vst [vmem:[%s466_s13] sm:$0xff] %v556_v23  ;;  %v1048_v24 = vpop.f32.mrb[1].mxu0  ;;  %v635_v25 = vpop.f32.mrb[0].mxu1 }
 0x1b3   : > { %639 = vst [vmem:[%s473_s10] sm:$0xff] %v635_v25  ;;  %v1059_v26 = vpop.f32.mrb[1].mxu1 }
 0x1b4   : > { %1394 = shalt.err (!%p1391_p12)
}
 0x1b5   : > { %s1395_s3 = scalar_lea.hbm %s1908_s27, 128  ;;  %s1399_s13 = scalar_lea.hbm %s2096_s20, 256 }
 0x1b6   : > { %p1396_p8 = scmp.ne.s32.totalorder %s1908_s27, %s1395_s3  ;;  %p1400_p5 = scmp.lt.u32.totalorder %s1908_s27, %s2096_s20 }
 0x1b7   : > { %p1401_p9 = scmp.lt.u32.totalorder %s1399_s13, %s1395_s3  ;;  %p1403_p4 = scmp.lt.u32.totalorder %s1395_s3, %s1908_s27 }
 0x1b8   : > { %p1397_p11 = pnand %p1396_p8, %p2098_p7 }
 0x1b9   : > { %p1402_p2 = por %p1401_p9, %p1400_p5 }
 0x1ba   : > { %p1398_p10 = pneg %p1397_p11 }
 0x1bb   : > { %p1404_p3 = por %p1403_p4, %p1402_p2 }
 0x1bd   : > { %p1405_p1 = pnand %p1404_p3, %p1398_p10 }
 0x1bf   : > { %1408 = shalt.err (!%p1405_p1)
}
 0x1c0   : > { %1107 = dma.vmem_to_hbm [thread:$0]  (%p2098_p7), %s1900_s18, 128, %s1908_s27, %s720_s8  }
 0x1c1   : > { %s1940_s12 = scalar_lea.sflag [#allocation15], %s403_s14  ;;  %s1409_s19 = scalar_lea.vmem %s1902_s1, 128 }
 0x1c2   : > { %p1410_p13 = scmp.ne.s32.totalorder %s1902_s1, %s1409_s19  ;;  %s1549_s17 = smov [#allocation14]  }
 0x1c3   : > { %s1413_s24 = sshll.u32 %s1549_s17, 4  ;;  %s1414_s24 = int_to_ptr.vmem [resolvable:$false] %s1413_s24 }
 0x1c4   : > { %p1411_p6 = pnand %p1410_p13, %p2098_p7  ;;  %s1415_s7 = scalar_lea.vmem %s1414_s24, 256 }
 0x1c5   : > { %p1416_p12 = scmp.lt.s32.totalorder %s1902_s1, %s1414_s24  ;;  %p1417_p8 = scmp.lt.s32.totalorder %s1415_s7, %s1409_s19 }
 0x1c6   : > { %p1412_p0 = pneg %p1411_p6 }
 0x1c7   : > { %p1418_p11 = por %p1417_p8, %p1416_p12 }
 0x1c9   : > { %p1419_p10 = pnand %p1418_p11, %p1412_p0 }
 0x1cb   : > { %1422 = shalt.err (!%p1419_p10)
}
 0x1cc   : > { %s1423_s11 = scalar_lea.hbm %s1914_s30, 128  ;;  %s1427_s27 = scalar_lea.hbm %s2097_s23, 256 }
 0x1cd   : > { %p1424_p5 = scmp.ne.s32.totalorder %s1914_s30, %s1423_s11  ;;  %p1428_p4 = scmp.lt.u32.totalorder %s1914_s30, %s2097_s23 }
 0x1ce   : > { %p1429_p3 = scmp.lt.u32.totalorder %s1427_s27, %s1423_s11  ;;  %p1431_p13 = scmp.lt.u32.totalorder %s1423_s11, %s1914_s30 }
 0x1cf   : > { %p1425_p9 = pnand %p1424_p5, %p2098_p7 }
 0x1d0   : > { %p1430_p1 = por %p1429_p3, %p1428_p4 }
 0x1d1   : > { %p1426_p2 = pneg %p1425_p9 }
 0x1d2   : > { %p1432_p6 = por %p1431_p13, %p1430_p1 }
 0x1d4   : > { %p1433_p0 = pnand %p1432_p6, %p1426_p2 }
 0x1d6   : > { %1436 = shalt.err (!%p1433_p0)
}
 0x1d7   : > { %1108 = dma.vmem_to_hbm [thread:$0]  (%p2098_p7), %s1902_s1, 128, %s1914_s30, %s1940_s12   ;;  %v714_v27 = vpop.f32.mrb[2].mxu0 }
 0x1d8   : > { %s480_s15 = scalar_lea.vmem [#allocation16], %s1861_s6  ;;  %s2099_s13 = sld [smem:[#allocation34_spill]]  ;;  %v1070_v28 = vpop.f32.mrb[3].mxu0 }
 0x1d9   : > { %s772_s3 = sshll.u32 %s480_s15, 4  ;;  %718 = vst [vmem:[%s480_s15] sm:$0xff] %v714_v27  ;;  %s1550_s6 = smov [#allocation16]   ;;  %s1965_s3 = int_to_ptr.vmem [resolvable:$true] %s772_s3 }
 0x1da   : > { %s1437_s26 = scalar_lea.vmem %s1965_s3, 128  ;;  %s1441_s1 = sshll.u32 %s1550_s6, 4  ;;  %s1442_s1 = int_to_ptr.vmem [resolvable:$false] %s1441_s1 }
 0x1db   : > { %p1438_p12 = scmp.ne.s32.totalorder %s1965_s3, %s1437_s26  ;;  %s1443_s30 = scalar_lea.vmem %s1442_s1, 256 }
 0x1dc   : > { %p1444_p10 = scmp.lt.s32.totalorder %s1965_s3, %s1442_s1  ;;  %p1445_p5 = scmp.lt.s32.totalorder %s1443_s30, %s1437_s26 }
 0x1dd   : > { %p1439_p8 = pnand %p1438_p12, %p2098_p7 }
 0x1de   : > { %s1971_s10 = scalar_lea.hbm %s2099_s13, %s1898_s9  ;;  %p1446_p9 = por %p1445_p5, %p1444_p10 }
 0x1df   : > { %p1440_p11 = pneg %p1439_p8 }
 0x1e1   : > { %p1447_p2 = pnand %p1446_p9, %p1440_p11 }
 0x1e3   : > { %1450 = shalt.err (!%p1447_p2)
}
 0x1e4   : > { %s1451_s9 = scalar_lea.hbm %s1971_s10, 128  ;;  %s1455_s24 = scalar_lea.hbm %s2099_s13, 256 }
 0x1e5   : > { %p1452_p4 = scmp.ne.s32.totalorder %s1971_s10, %s1451_s9  ;;  %p1456_p13 = scmp.lt.u32.totalorder %s1971_s10, %s2099_s13 }
 0x1e6   : > { %p1457_p6 = scmp.lt.u32.totalorder %s1455_s24, %s1451_s9  ;;  %p1459_p12 = scmp.lt.u32.totalorder %s1451_s9, %s1971_s10 }
 0x1e7   : > { %p1453_p3 = pnand %p1452_p4, %p2098_p7 }
 0x1e8   : > { %p1458_p0 = por %p1457_p6, %p1456_p13 }
 0x1e9   : > { %p1454_p1 = pneg %p1453_p3 }
 0x1ea   : > { %p1460_p8 = por %p1459_p12, %p1458_p0 }
 0x1ec   : > { %p1461_p11 = pnand %p1460_p8, %p1454_p1 }
 0x1ee   : > { %1464 = shalt.err (!%p1461_p11)
}
 0x1ef   : > { %1109 = dma.vmem_to_hbm [thread:$0]  (%p2098_p7), %s1965_s3, 128, %s1971_s10, %s1940_s12  }
 0x1f0 PF: > { %s2100_s14 = sld [smem:[#allocation23_spill]]  ;;  %s2101_s18 = sld [smem:[#allocation26_spill]] }
 0x1f1   : > { %s2102_s27 = sld [smem:[#allocation25_spill]] }
 0x1f6   : > { %s784_s8 = sand.u32 1, %s2100_s14   ;;  %p2103_p10 = scmp.ne.s32.totalorder %s2101_s18, 0 }
 0x1f7   : > { %p2104_p5 = scmp.ge.s32.totalorder %s2102_s27, 2  ;;  %s785_s25 = scalar_lea.sflag [#allocation4], %s784_s8 }
 0x1f9   : > { %p1134_p9 = pnand %p2104_p5, %p2103_p10 }
 0x1fb   : > { %1506 = dma.done.wait (!%p1134_p9), %s785_s25, 128  }
 0x1fc   : > { %1508 = vsyncadd (!%p1134_p9), %s785_s25, 4294967168  ;;  %s2105_s15 = sadd.s32 4294967294, %s2102_s27  }
 0x1fd   : > { %s793_s21 = sand.u32 1, %s2105_s15  }
 0x1fe   : > { %s794_s16 = scalar_lea.sflag [#allocation15], %s793_s21 }
 0x1ff   : > { %1510 = dma.done.wait (!%p1134_p9), %s794_s16, 256  }
 0x200   : > { %1512 = vsyncadd (!%p1134_p9), %s794_s16, 4294967040  ;;  %s33_s10 = sadd.s32 1, %s2102_s27   ;;  %s2106_s22 = sld [smem:[#allocation29_spill]] }
 0x201   : > { %p30_p7 = scmp.ge.s32.totalorder %s33_s10, 4   ;;  %s2107_s30 = sld [smem:[#allocation24_spill]] }
 0x202   : > { %s2108_s9 = sld [smem:[#allocation27_spill]]  ;;  %s2109_s27 = smov %s1519_s28 }
 0x203   : > { %s2110_s28 = smov %s1523_s29  ;;  %32 = sbr.rel (!%p30_p7) target bundleno = 18 (0x12), region = 157 }
 0x206   : > { %s2111_s29 = smov %s2106_s22 }
 0x20a   :  { %808 = vsyncpa [#allocation3], 1 }
 0x20b   :  { %810 = vsyncpa [#allocation3 + $0x1], 1 }
 0x20c   :  { %811 = vsyncpa [#allocation6], 1 }
 0x20d   :  { %813 = vsyncpa [#allocation6 + $0x1], 1 }
 0x20e   :  { %814 = vsyncpa [#allocation9], 1 }
 0x20f   :  { %815 = vsyncpa [#allocation12], 1 }
 0x210   :  { %816 = vsyncpa [#allocation4], 1 }
 0x211   :  { %818 = vsyncpa [#allocation4 + $0x1], 1 }
 0x212   :  { %819 = vsyncpa [#allocation15], 1 }
 0x213   :  { %821 = vsyncpa [#allocation15 + $0x1], 1 }

</bundles_post_ra>
